<compile_context>
chip_gen: v6e
topology: v6e:2x2x1
jax: 0.10.0
libtpu: 0.0.40
codegen_flags: <defaults>
</compile_context>

<pallas_src>
import jax
import jax.numpy as jnp
from jax.experimental import pallas as pl
from jax.experimental.pallas import tpu as pltpu


def daft_kernel(qw_ref, ctx_ref, aw_ref, scal_ref, out_ref):
    """One (B, D, TL) context tile -> one (B, TL) score tile.

    qw_ref   : (B, D, 1) f32   precomputed (proj(ttx) * Wa[:D]) for this t
    ctx_ref  : (B, D, TL)      context tile, L on the 128-lane axis
    aw_ref   : (B, TL)         attn_weight tile (lane-dense)
    scal_ref : (2,) f32 SMEM   [Wa[D], attn bias]
    out_ref  : (B, TL)         lane-dense output tile
    """
    qw = qw_ref[...]                                   # (B, D, 1), f32
    ctx = ctx_ref[...].astype(jnp.float32)             # (B, D, TL)

    # scores_{b,l} = sum_d qw_{b,d} * context_{b,d,l}  (sublane reduce over D;
    # qw broadcast along the lane axis is free).
    scores = jnp.sum(ctx * qw, axis=1)                 # (B, TL)

    aw = aw_ref[...].astype(jnp.float32)               # (B, TL)
    wa_last = scal_ref[0]                              # scalar (SMEM)
    ba = scal_ref[1]                                   # scalar (SMEM)
    out_ref[...] = (scores + aw * wa_last + ba).astype(out_ref.dtype)


def daft_prepare(question, context, params, *, stream_dtype=None):
    """One-time prep (analogue of DAFT.set_context + weight folding).

    Does the single layout repack of context to (B, D, L) (and optional bf16
    cast) and precomputes everything t-independent, so the per-t forward call
    streams context from HBM exactly once with no wrapper-side HBM passes.

    params: {"attn_w": (1, D+1), "attn_b": (1,), "proj_w": (D, D+1),
             "proj_b": (D,)} -- nn.Linear weight layouts (out, in).
    """
    B, D = question.shape

    wq = params["proj_w"].astype(jnp.float32)           # (D, D+1)
    bq = params["proj_b"].astype(jnp.float32)           # (D,)
    wa = params["attn_w"].astype(jnp.float32)           # (1, D+1)
    wa_ctx = wa[0, :D]                                   # (D,)
    wa_last = wa[0, D]                                   # scalar
    ba = params["attn_b"].astype(jnp.float32)[0]         # scalar

    # q(t) = t * wq[:, 0] + question @ wq[:, 1:].T + bq   (projection in f32)
    # qw(t) = q(t) * wa_ctx  = base_w + t * tcol_w
    q_base = question.astype(jnp.float32) @ wq[:, 1:].T + bq      # (B, D)
    base_w = q_base * wa_ctx[None, :]                              # (B, D)
    tcol_w = wq[:, 0] * wa_ctx                                     # (D,)

    # One-time repack: L onto the 128-lane axis, D onto sublanes.
    ctx_t = jnp.transpose(context, (0, 2, 1))                      # (B, D, L)
    if stream_dtype is not None:
        ctx_t = ctx_t.astype(stream_dtype)                         # e.g. bf16

    scalars = jnp.stack([wa_last, ba]).astype(jnp.float32)         # (2,) SMEM

    return {"ctx_t": ctx_t, "base_w": base_w, "tcol_w": tcol_w,
            "scalars": scalars}


def daft_forward(t, attn_weight, prepared, *, tl=8192):
    """Per-t call (analogue of DAFT.forward(t, attn_weight))."""
    ctx_t = prepared["ctx_t"]
    B, D, L = ctx_t.shape
    out_dtype = attn_weight.dtype

    # Tiny per-call scalar work (L-invariant), kept out of the kernel.
    t_f = jnp.asarray(t, jnp.float32)
    qw = (prepared["base_w"] + t_f * prepared["tcol_w"][None, :])[..., None]
    qw = qw.astype(jnp.float32)                                    # (B, D, 1)

    aw = attn_weight[..., 0]                                       # (B, L)

    # ---- L tiling: big tiles, no padding (partial last block is masked) ---
    ctx_isz = jnp.dtype(ctx_t.dtype).itemsize
    aw_isz = jnp.dtype(aw.dtype).itemsize
    out_isz = jnp.dtype(out_dtype).itemsize

    def _buf_bytes(tile):
        # double-buffered context + attn_weight + output tiles
        return 2 * (B * D * tile * ctx_isz + B * tile * aw_isz
                    + B * tile * out_isz)

    TILE_BUDGET = 24 * 2 ** 20   # keeps double-buffered tiles well inside v7x
    tl_eff = min(tl, L)
    if tl_eff < L:
        tl_eff = max(128, (tl_eff // 128) * 128)
    while _buf_bytes(tl_eff) > TILE_BUDGET and tl_eff > 128:
        tl_eff = max(128, ((tl_eff // 2) // 128) * 128)

    n_tiles = pl.cdiv(L, tl_eff)

    # VMEM limit: derived from the tile footprint, capped at 48 MiB so it
    # leaves headroom on v7x's 64 MiB physical VMEM.
    vmem_limit = int(max(16 * 2 ** 20,
                         min(48 * 2 ** 20, _buf_bytes(tl_eff) + (8 << 20))))

    cost = pl.CostEstimate(
        flops=int(2 * B * L * (D + 1)),
        transcendentals=0,
        bytes_accessed=int(ctx_t.size * ctx_isz + aw.size * aw_isz
                           + B * L * out_isz + qw.size * 4),
    )

    # TODO(synk): on v7x, confirm via xprof that the "parallel" L axis shards
    # across both TensorCores; if not, switch to pltpu.CORE_PARALLEL.
    out = pl.pallas_call(
        daft_kernel,
        out_shape=jax.ShapeDtypeStruct((B, L), out_dtype),
        grid_spec=pltpu.PrefetchScalarGridSpec(
            num_scalar_prefetch=0,
            grid=(n_tiles,),
            in_specs=[
                pl.BlockSpec((B, D, 1), lambda l: (0, 0, 0)),       # qw (bcast)
                pl.BlockSpec((B, D, tl_eff), lambda l: (0, 0, l)),  # context
                pl.BlockSpec((B, tl_eff), lambda l: (0, l)),        # attn_weight
                pl.BlockSpec(memory_space=pltpu.MemorySpace.SMEM),  # scalars
            ],
            out_specs=pl.BlockSpec((B, tl_eff), lambda l: (0, l)),
        ),
        compiler_params=pltpu.CompilerParams(
            dimension_semantics=("parallel",),
            vmem_limit_bytes=vmem_limit),
        cost_estimate=cost,
    )(qw, ctx_t, aw, prepared["scalars"])

    return out[..., None]                                          # (B, L, 1)


def daft_apply(t, question, context, attn_weight, params, *,
               tl=8192, stream_dtype=None):
    """One-shot convenience wrapper (prepare + forward)."""
    prepared = daft_prepare(question, context, params,
                            stream_dtype=stream_dtype)
    return daft_forward(t, attn_weight, prepared, tl=tl)


def daft_reference(t, question, context, attn_weight, params):
    """Pure-JAX port of the PyTorch forward, for correctness checking."""
    B, _ = question.shape
    tt = jnp.ones((B, 1), question.dtype) * t
    ttx = jnp.concatenate([tt, question], axis=1)
    q = ttx @ params["proj_w"].T + params["proj_b"]
    cp = jnp.concatenate([q[:, None, :] * context, attn_weight], axis=2)
    return cp @ params["attn_w"].T + params["attn_b"]


def xavier_uniform(key, shape):
    # shape = (out_features, in_features), matching nn.Linear.weight
    fan_out, fan_in = shape
    bound = (6.0 / (fan_in + fan_out)) ** 0.5
    return jax.random.uniform(key, shape, jnp.float32, -bound, bound)


if __name__ == "__main__":
    key = jax.random.PRNGKey(0)
    k1, k2, k3, k4, k5, k6, k7 = jax.random.split(key, 7)

    B, D = 2, 32
    # Deterministic synthetic parameters (shapes from DAFT.__init__).
    params = {
        "attn_w": xavier_uniform(k1, (1, D + 1)),       # attn: Linear(D+1, 1)
        "attn_b": jnp.zeros((1,), jnp.float32),
        "proj_w": xavier_uniform(k2, (D, D + 1)),       # proj: Linear(D+1, D)
        "proj_b": jnp.zeros((D,), jnp.float32),
    }
    t = 0.5

    # --- check 1: small single full-extent tile (L=16), one-shot wrapper ---
    L1 = 16
    question = jax.random.normal(k3, (B, D), jnp.float32)
    context = jax.random.normal(k4, (B, L1, D), jnp.float32)
    attn_weight = jax.random.normal(k5, (B, L1, 1), jnp.float32)

    out = jax.block_until_ready(
        daft_apply(t, question, context, attn_weight, params))
    ref = daft_reference(t, question, context, attn_weight, params)
    assert out.shape == (B, L1, 1)
    assert jnp.allclose(out, ref, atol=1e-5, rtol=1e-5)

    # --- check 2: multi-tile grid with PARTIAL last block (tl=128, L=200) --
    L2 = 200
    context2 = jax.random.normal(k6, (B, L2, D), jnp.float32)
    attn_weight2 = jax.random.normal(k7, (B, L2, 1), jnp.float32)

    prep2 = daft_prepare(question, context2, params)        # one-time repack
    out2 = jax.block_until_ready(
        daft_forward(t, attn_weight2, prep2, tl=128))
    ref2 = daft_reference(t, question, context2, attn_weight2, params)
    assert out2.shape == (B, L2, 1)
    assert jnp.allclose(out2, ref2, atol=1e-5, rtol=1e-5)

    # --- check 2b: ODE-style reuse of the same prepared context, new t -----
    t2 = 0.125
    out2b = jax.block_until_ready(daft_forward(t2, attn_weight2, prep2))
    ref2b = daft_reference(t2, question, context2, attn_weight2, params)
    assert jnp.allclose(out2b, ref2b, atol=1e-5, rtol=1e-5)

    # --- check 3: bf16 context streaming (relaxed tolerance) ---------------
    prep3 = daft_prepare(question, context2, params,
                         stream_dtype=jnp.bfloat16)
    out3 = jax.block_until_ready(daft_forward(t, attn_weight2, prep3, tl=128))
    assert out3.shape == (B, L2, 1)
    assert jnp.allclose(out3, ref2, atol=3e-2, rtol=3e-2)

    print("KERNEL_OK")
</pallas_src>

<mosaic_0001>
module attributes {stable_mosaic.version = 11 : i64} {
  func.func @daft_kernel(%arg0: i32, %arg1: memref<2x32x1xf32, #tpu.memory_space<vmem>>, %arg2: memref<2x32x16xf32, #tpu.memory_space<vmem>>, %arg3: memref<2x16xf32, #tpu.memory_space<vmem>>, %arg4: memref<2xf32, #tpu.memory_space<smem>>, %arg5: memref<2x16xf32, #tpu.memory_space<vmem>>) attributes {dimension_semantics = [#tpu.dimension_semantics<parallel>], iteration_bounds = array<i64: 1>, scalar_prefetch = 0 : i64, scratch_operands = 0 : i64, tpu.core_type = #tpu.core_type<tc>, window_params = [{pipeline_mode = #tpu.pipeline_mode<synchronous>, transform_indices = @transform_0, window_bounds = array<i64: 2, 32, 1>}, {transform_indices = @transform_1, window_bounds = array<i64: 2, 32, 16>}, {transform_indices = @transform_2, window_bounds = array<i64: 2, 16>}, {transform_indices = @transform_3, window_bounds = array<i64: 2>}, {transform_indices = @transform_4, window_bounds = array<i64: 2, 16>}]} {
    %c0 = arith.constant 0 : index
    %c0_0 = arith.constant 0 : index
    %c0_1 = arith.constant 0 : index
    %0 = vector.load %arg1[%c0, %c0_0, %c0_1] : memref<2x32x1xf32, #tpu.memory_space<vmem>>, vector<2x32x1xf32>
    %c0_2 = arith.constant 0 : index
    %c0_3 = arith.constant 0 : index
    %c0_4 = arith.constant 0 : index
    %1 = vector.load %arg2[%c0_2, %c0_3, %c0_4] : memref<2x32x16xf32, #tpu.memory_space<vmem>>, vector<2x32x16xf32>
    %2 = vector.broadcast %0 : vector<2x32x1xf32> to vector<2x32x16xf32>
    %3 = arith.mulf %1, %2 : vector<2x32x16xf32>
    %cst = arith.constant dense<0.000000e+00> : vector<2x16xf32>
    %4 = vector.multi_reduction <add>, %3, %cst [1] : vector<2x32x16xf32> to vector<2x16xf32>
    %c0_5 = arith.constant 0 : index
    %c0_6 = arith.constant 0 : index
    %5 = vector.load %arg3[%c0_5, %c0_6] : memref<2x16xf32, #tpu.memory_space<vmem>>, vector<2x16xf32>
    %c0_7 = arith.constant 0 : index
    %6 = memref.load %arg4[%c0_7] : memref<2xf32, #tpu.memory_space<smem>>
    %c1 = arith.constant 1 : index
    %7 = memref.load %arg4[%c1] : memref<2xf32, #tpu.memory_space<smem>>
    %8 = vector.broadcast %6 : f32 to vector<2x16xf32>
    %9 = arith.mulf %5, %8 : vector<2x16xf32>
    %10 = arith.addf %4, %9 : vector<2x16xf32>
    %11 = vector.broadcast %7 : f32 to vector<2x16xf32>
    %12 = arith.addf %10, %11 : vector<2x16xf32>
    %c0_8 = arith.constant 0 : index
    %c0_9 = arith.constant 0 : index
    %13 = vector.load %arg5[%c0_8, %c0_9] : memref<2x16xf32, #tpu.memory_space<vmem>>, vector<2x16xf32>
    tpu.vector_store %arg5[%c0_8, %c0_9], %12 {strides = array<i32>} : memref<2x16xf32, #tpu.memory_space<vmem>>, vector<2x16xf32>,
    return
  }
  func.func @transform_0(%arg0: i32) -> (i32, i32, i32) {
    %c0_i32 = arith.constant 0 : i32
    %c0_i32_0 = arith.constant 0 : i32
    %c0_i32_1 = arith.constant 0 : i32
    %c0_i32_2 = arith.constant 0 : i32
    return %c0_i32, %c0_i32_0, %c0_i32_1 : i32, i32, i32
  }
  func.func @transform_1(%arg0: i32) -> (i32, i32, i32) {
    %c0_i32 = arith.constant 0 : i32
    %c0_i32_0 = arith.constant 0 : i32
    %c0_i32_1 = arith.constant 0 : i32
    return %c0_i32, %c0_i32_0, %arg0 : i32, i32, i32
  }
  func.func @transform_2(%arg0: i32) -> (i32, i32) {
    %c0_i32 = arith.constant 0 : i32
    %c0_i32_0 = arith.constant 0 : i32
    return %c0_i32, %arg0 : i32, i32
  }
  func.func @transform_3(%arg0: i32) -> i32 {
    %c0_i32 = arith.constant 0 : i32
    %c0_i32_0 = arith.constant 0 : i32
    return %c0_i32 : i32
  }
  func.func @transform_4(%arg0: i32) -> (i32, i32) {
    %c0_i32 = arith.constant 0 : i32
    %c0_i32_0 = arith.constant 0 : i32
    return %c0_i32, %arg0 : i32, i32
  }
}

</mosaic_0001>

<bundles_post_ra>
// kernel: tpu_custom_call.1
= control target key start
LH: loop header
LB: loop body
LE: loop exit
PB: predicated region body
PF: predicated region fallthrough
CT: control target
= control target key end

     0   :  { %9 = vsyncpa [#allocation4], 0  ;;  %s294_s0 = inlined_call_operand.vmem [shape: f32[2,32,1], index: 0, kind: input, shape index: {}]   ;;  %s295_s1 = inlined_call_operand.vmem [shape: f32[2,32,16], index: 1, kind: input, shape index: {}]   ;;  %s296_s2 = inlined_call_operand.vmem [shape: f32[2,16], index: 2, kind: input, shape index: {}]   ;;  %s297_s3 = inlined_call_operand.vmem [shape: f32[2], index: 3, kind: input, shape index: {}]   ;;  %s298_s4 = inlined_call_operand.hbm [shape: f32[2,16], index: 4, kind: output, shape index: {}]  }
   0x1   :  { %10 = vsyncpa [#allocation3], 0  ;;  %s23_s17 = sshll.u32 %s297_s3, 4  ;;  %s24_s17 = int_to_ptr.vmem [resolvable:$true] %s23_s17 }
   0x2   :  { %s165_s18 = scalar_lea.vmem %s24_s17, 16  ;;  %p170_p1 = scmp.lt.s32.totalorder %s24_s17, %s24_s17 }
   0x3   :  { %p166_p0 = scmp.ne.s32.totalorder %s24_s17, %s165_s18  ;;  %p171_p2 = scmp.lt.s32.totalorder %s165_s18, %s165_s18 }
   0x5   :  { %p172_p3 = por %p171_p2, %p170_p1 }
   0x7   :  { %p173_p4 = pnand %p172_p3, %p166_p0 }
   0x9   :  { %176 = shalt.err (!%p173_p4)
}
   0xa   :  { %s201_s19 = smov [#allocation2]  }
   0xb   :  { %26 = dma.vmem_to_smem %s24_s17, 16, %s201_s19, [#allocation4]  }
   0xc   :  { %197 = dma.done.wait [#allocation4], 16  }
   0xd   :  { %198 = vsyncadd [#allocation4], 4294967280 }
   0xe   :  { %30 = sfence }
   0xf   :  { %v35_v0 = vld [vmem:[%s294_s0 + $0x20] sm:$0xff]  ;;  %v202_v2 = vmov 0   ;;  %v36_v3 = vld [vmem:[%s294_s0 + $0x28] sm:$0xff]  ;;  %v37_v5 = vld [vmem:[%s294_s0 + $0x30] sm:$0xff]  ;;  %vm95_vm0 = vcmask 130048   ;;  %s123_s3 = sld [smem:[#allocation2]] }
  0x10   :  { %v31_v1 = vld [vmem:[%s294_s0] sm:$0xff]  ;;  %164 = vset.pattern.permute.xlu1 %v202_v2  ;;  %163 = vset.pattern.permute.xlu0 %v202_v2  ;;  %v32_v4 = vld [vmem:[%s294_s0 + $0x8] sm:$0xff]  ;;  %v33_v6 = vld [vmem:[%s294_s0 + $0x10] sm:$0xff]  ;;  %s159_s25 = sld [smem:[#allocation2 + $0x1]]  ;;  %s203_s26 = smov [#allocation5]   ;;  %vm139_vm1 = vcmask 1041409  }
  0x11   :  { %69 = vperm.xlu0 %163, %v35_v0   ;;  %49 = vperm.xlu1 %164, %v31_v1   ;;  %v38_v7 = vld [vmem:[%s294_s0 + $0x38] sm:$0xff]  ;;  %v44_v11 = vld [vmem:[%s295_s1 + $0x28] sm:$0xff]  ;;  %v43_v13 = vld [vmem:[%s295_s1 + $0x20] sm:$0xff]  ;;  %vm142_vm2 = vcmask 123904  }
  0x12   :  { %v34_v8 = vld [vmem:[%s294_s0 + $0x18] sm:$0xff]  ;;  %v40_v12 = vld [vmem:[%s295_s1 + $0x8] sm:$0xff]  ;;  %v39_v14 = vld [vmem:[%s295_s1] sm:$0xff] }
  0x13   :  { %v45_v19 = vld [vmem:[%s295_s1 + $0x30] sm:$0xff]  ;;  %v46_v29 = vld [vmem:[%s295_s1 + $0x38] sm:$0xff]  ;;  %v122_v49 = vld [vmem:[%s296_s2] sm:$0x3]  ;;  %s150_s2 = sshll.u32 %s203_s26, 4  ;;  %s151_s2 = int_to_ptr.vmem [resolvable:$true] %s150_s2 }
  0x14   :  { %v41_v20 = vld [vmem:[%s295_s1 + $0x10] sm:$0xff]  ;;  %v42_v30 = vld [vmem:[%s295_s1 + $0x18] sm:$0xff]  ;;  %s177_s27 = scalar_lea.vmem %s151_s2, 32  ;;  %p182_p6 = scmp.lt.s32.totalorder %s151_s2, %s151_s2 }
  0x15   :  { %74 = vperm.xlu0 %163, %v36_v3   ;;  %54 = vperm.xlu1 %164, %v32_v4   ;;  %v125_v50 = vstv %s123_s3  ;;  %p178_p5 = scmp.ne.s32.totalorder %s151_s2, %s177_s27  ;;  %p183_p7 = scmp.lt.s32.totalorder %s177_s27, %s177_s27 }
  0x16   :  { %v126_v55 = vmul.f32 %v125_v50, %v122_v49  ;;  %v133_v63 = vstv %s159_s25 }
  0x17   :  { %p184_p8 = por %p183_p7, %p182_p6 }
  0x18   :  { %v128_v60 = vrot.slane %v126_v55, 1 }
  0x19   :  { %79 = vperm.xlu0 %163, %v37_v5   ;;  %59 = vperm.xlu1 %164, %v33_v6   ;;  %p185_p9 = pnand %p184_p8, %p178_p5 }
  0x1d   :  { %84 = vperm.xlu0 %163, %v38_v7   ;;  %64 = vperm.xlu1 %164, %v34_v8  }
  0x8c   :  { %v70_v9 = vpop.permute.xlu0 %69  ;;  %v50_v10 = vpop.permute.xlu1 %49 }
  0x8d   :  { %v91_v21 = vmul.f32 %v70_v9, %v43_v13  ;;  %v87_v22 = vmul.f32 %v50_v10, %v39_v14 }
  0x8f   :  { %v109_v31 = vsel %vm95_vm0, %v91_v21, 0.0  ;;  %v96_v32 = vsel %vm95_vm0, %v87_v22, 0.0 }
  0x90   :  { %v75_v15 = vpop.permute.xlu0 %74  ;;  %v55_v16 = vpop.permute.xlu1 %54 }
  0x91   :  { %v92_v17 = vmul.f32 %v75_v15, %v44_v11  ;;  %v88_v18 = vmul.f32 %v55_v16, %v40_v12 }
  0x93   :  { %v110_v25 = vsel %vm95_vm0, %v92_v17, 0.0  ;;  %v97_v26 = vsel %vm95_vm0, %v88_v18, 0.0 }
  0x94   :  { %v80_v23 = vpop.permute.xlu0 %79  ;;  %v60_v24 = vpop.permute.xlu1 %59  ;;  %v111_v35 = vadd.f32 %v110_v25, %v109_v31  ;;  %v98_v36 = vadd.f32 %v97_v26, %v96_v32 }
  0x95   :  { %v93_v27 = vmul.f32 %v80_v23, %v45_v19  ;;  %v89_v28 = vmul.f32 %v60_v24, %v41_v20 }
  0x97   :  { %v112_v33 = vsel %vm95_vm0, %v93_v27, 0.0  ;;  %v99_v34 = vsel %vm95_vm0, %v89_v28, 0.0 }
  0x98   :  { %v85_v37 = vpop.permute.xlu0 %84  ;;  %v65_v38 = vpop.permute.xlu1 %64  ;;  %v113_v41 = vadd.f32 %v112_v33, %v111_v35  ;;  %v100_v42 = vadd.f32 %v99_v34, %v98_v36 }
  0x99   :  { %v94_v39 = vmul.f32 %v85_v37, %v46_v29  ;;  %v90_v40 = vmul.f32 %v65_v38, %v42_v30 }
  0x9b   :  { %v114_v43 = vsel %vm95_vm0, %v94_v39, 0.0  ;;  %v101_v44 = vsel %vm95_vm0, %v90_v40, 0.0 }
  0x9c   :  { %v115_v45 = vadd.f32 %v114_v43, %v113_v41  ;;  %v102_v46 = vadd.f32 %v101_v44, %v100_v42 }
  0x9e   :  { %v116_v47 = vrot.slane %v115_v45, 4  ;;  %v103_v48 = vrot.slane %v102_v46, 4 }
  0xa0   :  { %v117_v51 = vadd.f32 %v116_v47, %v115_v45  ;;  %v104_v52 = vadd.f32 %v103_v48, %v102_v46 }
  0xa2   :  { %v118_v53 = vrot.slane %v117_v51, 2  ;;  %v105_v54 = vrot.slane %v104_v52, 2 }
  0xa4   :  { %v119_v56 = vadd.f32 %v118_v53, %v117_v51  ;;  %v106_v57 = vadd.f32 %v105_v54, %v104_v52 }
  0xa6   :  { %v120_v58 = vrot.slane %v119_v56, 1  ;;  %v107_v59 = vrot.slane %v106_v57, 1 }
  0xa8   :  { %v121_v61 = vadd.f32 %v120_v58, %v119_v56  ;;  %v108_v62 = vadd.f32 %v107_v59, %v106_v57 }
  0xaa   :  { %v131_v0 = vadd.f32 %v126_v55, %v108_v62  ;;  %v132_v1 = vadd.f32 %v128_v60, %v121_v61 }
  0xac   :  { %v135_v2 = vadd.f32 %v133_v63, %v132_v1  ;;  %v134_v3 = vadd.f32 %v133_v63, %v131_v0 }
  0xae   :  { %v138_v4 = vrot.slane %v135_v2, 7 }
  0xb0   :  { %v140_v5 = vsel %vm139_vm1, %v138_v4, %v134_v3 }
  0xb1   :  { %143 = vst.msk [vmem:[#allocation5] sm:$0x3] %vm142_vm2, %v140_v5 }
  0xb2   :  { %188 = shalt.err (!%p185_p9)
}
  0xb3   :  { %153 = dma.vmem_to_hbm [thread:$0]  %s151_s2, 32, %s298_s4, [#allocation3]  }
  0xb4   :  { %199 = dma.done.wait [#allocation3], 32  }
  0xb5   :  { %200 = vsyncadd [#allocation3], 4294967264 }
  0xb6   :  { %157 = vsyncpa [#allocation3], 1 }
  0xb7   :  { %158 = vsyncpa [#allocation4], 1 }

</bundles_post_ra>
